<compile_context>
chip_gen: v7x
topology: tpu7x:2x2x1
jax: 0.10.0
libtpu: 0.0.40
codegen_flags: <defaults>
</compile_context>

<pallas_src>
import functools

import jax
import jax.numpy as jnp
from jax.experimental import pallas as pl
from jax.experimental.pallas import tpu as pltpu


def _round_up(x, m):
    return ((x + m - 1) // m) * m


def _pool_linear_kernel(x_ref, w_ref, b_ref, o_ref, *, reduce_axis):
    """x_ref: [TB, C, HW] (reduce_axis=2) or [TB, HW, C] (reduce_axis=1);
       w_ref: [C, Kpad] with 1/HW pre-folded; b_ref: [1, Kpad] f32; o_ref: [TB, Kpad] f32."""
    # Global average pool: spatial sum accumulated in f32 (the 1/HW scale lives in w_ref).
    s = jnp.sum(x_ref[...], axis=reduce_axis, dtype=jnp.float32)            # [TB, C]
    # Feed the MXU in the resident weight's dtype -- no per-step cast of the C x Kpad block.
    s = s.astype(w_ref.dtype)
    logits = jnp.dot(s, w_ref[...], preferred_element_type=jnp.float32)     # [TB, Kpad] f32
    o_ref[...] = logits + b_ref[...]                                        # bias already f32


def prepare_head_params(weight_kc, bias_k, spatial_size, *, param_dtype=None):
    """One-time prep of nn.Linear(C, K) params (hoisted out of the per-call hot path).

    Returns (w_t, b): w_t [C, Kpad] with the 1/(H*W) pooling scale folded in (transposed,
    zero-padded to a lane-dense Kpad), b [1, Kpad] float32.
    """
    K, C = weight_kc.shape
    k_pad = _round_up(K, 128)                    # lane-dense output stores / MXU-friendly N
    dt = jnp.dtype(param_dtype) if param_dtype is not None else weight_kc.dtype
    w_scaled = (weight_kc.astype(jnp.float32) / float(spatial_size)).astype(dt)
    w_t = jnp.zeros((C, k_pad), dt).at[:, :K].set(w_scaled.T)
    b = jnp.zeros((1, k_pad), jnp.float32).at[0, :K].set(bias_k.astype(jnp.float32))
    return w_t, b


def classification_head_forward(features, w_t, b, num_classes, *,
                                channels_last=False, block_batch=None):
    """features: [B, C, H, W] (module layout) or [B, H, W, C] if channels_last.
       w_t, b: from prepare_head_params.  Returns float32 logits [B, num_classes]."""
    if channels_last:
        B, H, W, C = features.shape
        x = features.reshape(B, H * W, C)        # token layout: lane axis = C (dense)
        reduce_axis = 1
    else:
        B, C, H, W = features.shape
        x = features.reshape(B, C, H * W)        # free reshape only, no transpose
        reduce_axis = 2
    HW = H * W
    assert w_t.shape[0] == C
    k_pad = w_t.shape[1]

    itemsize = jnp.dtype(x.dtype).itemsize
    sublane = max(8, 32 // itemsize)             # 8 (f32) / 16 (bf16) / 32 (int8)

    # Padded per-sample VMEM footprint of one input-tile row (lane dim -> 128,
    # second-last dim -> dtype sublane multiple).
    if channels_last:
        per_sample = _round_up(HW, sublane) * _round_up(C, 128) * itemsize
    else:
        per_sample = _round_up(C, sublane) * _round_up(HW, 128) * itemsize
    out_row = k_pad * 4                          # f32 output row

    # Generation-aware VMEM budget: v5e/v6e have 128 MiB physical VMEM, v7x 64 MiB per TC.
    try:
        vmem_cap = int(pltpu.get_tpu_info().vmem_capacity_bytes)
    except Exception:
        vmem_cap = 64 * 1024 * 1024              # conservative fallback (v7x per-TC)
    vmem_limit = min(max((vmem_cap * 3) // 4, 32 * 1024 * 1024), 96 * 1024 * 1024)
    budget = vmem_limit // 2                     # headroom for Mosaic internal scratch

    # Resident head params (counted with 2 buffers to stay safe if Buffered(1) falls back).
    resident = w_t.size * jnp.dtype(w_t.dtype).itemsize + b.size * 4

    if block_batch is None:
        tb = (budget - 2 * resident) // (2 * (per_sample + out_row))  # dbl-buffered in + out
        tb = max(1, int(tb))
        if tb >= B:
            tb = B
        elif tb >= 8:
            tb = (tb // 8) * 8                   # output block's sublane (M) alignment
        else:
            # (8,128) rule: output second-last dim must be a multiple of 8 unless == B.
            # Padded-footprint sizing above keeps this safe for Swin-sized feature maps.
            tb = 8
        # Keep >= 2 grid steps when the batch allows it: lets the "parallel" batch axis
        # shard across v7x's 2 TensorCores and preserves pipeline/writeback overlap
        # (harmless extra step on single-TC v5e/v6e).
        if B > 8:
            tb = min(tb, _round_up(pl.cdiv(B, 2), 8))
    else:
        tb = min(int(block_batch), B)
    grid = (pl.cdiv(B, tb),)

    cost = pl.CostEstimate(
        flops=B * C * HW + 2 * B * C * k_pad + B * k_pad,
        transcendentals=0,
        bytes_accessed=x.size * itemsize
        + w_t.size * jnp.dtype(w_t.dtype).itemsize
        + b.size * 4
        + B * k_pad * 4,
    )

    def _run(single_buffer_params):
        wb_kw = {"pipeline_mode": pl.Buffered(1)} if single_buffer_params else {}
        in_specs = [
            pl.BlockSpec((tb,) + x.shape[1:], lambda i: (i, 0, 0)),   # pipelined batch tiles
            pl.BlockSpec(w_t.shape, lambda i: (0, 0), **wb_kw),       # resident weight
            pl.BlockSpec(b.shape, lambda i: (0, 0), **wb_kw),         # resident bias
        ]
        return pl.pallas_call(
            functools.partial(_pool_linear_kernel, reduce_axis=reduce_axis),
            out_shape=jax.ShapeDtypeStruct((B, k_pad), jnp.float32),
            grid_spec=pltpu.PrefetchScalarGridSpec(
                num_scalar_prefetch=0,
                grid=grid,
                in_specs=in_specs,
                out_specs=pl.BlockSpec((tb, k_pad), lambda i: (i, 0)),
            ),
            compiler_params=pltpu.CompilerParams(
                dimension_semantics=("parallel",),
                vmem_limit_bytes=vmem_limit,
            ),
            cost_estimate=cost,
        )(x, w_t, b)

    try:
        out = _run(True)
    except Exception:
        # pipeline_mode=pl.Buffered(1) unsupported on this jax version -> default buffering.
        out = _run(False)
    return out[:, :num_classes]


if __name__ == "__main__":
    # Small shapes consistent with the module's forward (output_channels stand-in 32,
    # spatial 8x8, number_of_classes 10).  B=16 exercises a 2-step batch grid.
    B, C, H, W, K = 16, 32, 8, 8, 10

    key = jax.random.PRNGKey(0)
    k_feat, k_w, k_b = jax.random.split(key, 3)

    # Last feature map from the (stubbed) backbone, NCHW as in the PyTorch module.
    features = jax.random.normal(k_feat, (B, C, H, W), dtype=jnp.float32)

    # Deterministic init of the classification head (nn.Linear(C, K)): weight [K, C], bias [K].
    bound = 1.0 / jnp.sqrt(jnp.float32(C))
    weight = jax.random.uniform(k_w, (K, C), minval=-bound, maxval=bound, dtype=jnp.float32)
    bias = jax.random.uniform(k_b, (K,), minval=-bound, maxval=bound, dtype=jnp.float32)

    # One-time head-parameter prep (pad/transpose + 1/HW fold), hoisted out of the hot path.
    w_t, b = prepare_head_params(weight, bias, H * W)

    # Module-layout (NCHW) path.
    out = classification_head_forward(features, w_t, b, K)
    out = jax.block_until_ready(out)

    # Lane-dense token-layout path for backbones that can hand over channels-last features.
    out_cl = classification_head_forward(
        jnp.transpose(features, (0, 2, 3, 1)), w_t, b, K, channels_last=True)
    out_cl = jax.block_until_ready(out_cl)

    # Reference check (plain JAX): global avg pool + linear, float32 logits.
    pooled_ref = jnp.mean(features, axis=(2, 3))           # [B, C]
    ref = pooled_ref @ weight.T + bias                     # [B, K]
    assert out.shape == (B, K) and out.dtype == jnp.float32
    assert jnp.allclose(out, ref, atol=1e-4, rtol=1e-4)
    assert jnp.allclose(out_cl, ref, atol=1e-4, rtol=1e-4)

    print("KERNEL_OK")
</pallas_src>

<mosaic_0001>
module attributes {stable_mosaic.version = 11 : i64} {
  func.func @_pool_linear_kernel(%arg0: i32, %arg1: memref<8x32x64xf32, #tpu.memory_space<vmem>>, %arg2: memref<32x128xf32, #tpu.memory_space<vmem>>, %arg3: memref<1x128xf32, #tpu.memory_space<vmem>>, %arg4: memref<8x128xf32, #tpu.memory_space<vmem>>) attributes {dimension_semantics = [#tpu.dimension_semantics<parallel>], iteration_bounds = array<i64: 2>, scalar_prefetch = 0 : i64, scratch_operands = 0 : i64, tpu.core_type = #tpu.core_type<tc>, window_params = [{transform_indices = @transform_0, window_bounds = array<i64: 8, 32, 64>}, {pipeline_mode = #tpu.pipeline_mode<synchronous>, transform_indices = @transform_1, window_bounds = array<i64: 32, 128>}, {pipeline_mode = #tpu.pipeline_mode<synchronous>, transform_indices = @transform_2, window_bounds = array<i64: 1, 128>}, {transform_indices = @transform_3, window_bounds = array<i64: 8, 128>}]} {
    %c0 = arith.constant 0 : index
    %c0_0 = arith.constant 0 : index
    %c0_1 = arith.constant 0 : index
    %0 = vector.load %arg1[%c0, %c0_0, %c0_1] : memref<8x32x64xf32, #tpu.memory_space<vmem>>, vector<8x32x64xf32>
    %cst = arith.constant dense<0.000000e+00> : vector<8x32xf32>
    %1 = vector.multi_reduction <add>, %0, %cst [2] : vector<8x32x64xf32> to vector<8x32xf32>
    %c0_2 = arith.constant 0 : index
    %c0_3 = arith.constant 0 : index
    %2 = vector.load %arg2[%c0_2, %c0_3] : memref<32x128xf32, #tpu.memory_space<vmem>>, vector<32x128xf32>
    %cst_4 = arith.constant dense<0.000000e+00> : vector<8x128xf32>
    %3 = tpu.matmul %1, %2, %cst_4 {dimension_numbers = #tpu.dot_dimension_numbers<[1], [0], [0], [1], [0, 0, 1, 1], [], []>} : vector<8x32xf32>, vector<32x128xf32>, vector<8x128xf32> -> vector<8x128xf32>
    %c0_5 = arith.constant 0 : index
    %c0_6 = arith.constant 0 : index
    %4 = vector.load %arg3[%c0_5, %c0_6] : memref<1x128xf32, #tpu.memory_space<vmem>>, vector<1x128xf32>
    %5 = vector.broadcast %4 : vector<1x128xf32> to vector<8x128xf32>
    %6 = arith.addf %3, %5 : vector<8x128xf32>
    %c0_7 = arith.constant 0 : index
    %c0_8 = arith.constant 0 : index
    %7 = vector.load %arg4[%c0_7, %c0_8] : memref<8x128xf32, #tpu.memory_space<vmem>>, vector<8x128xf32>
    tpu.vector_store %arg4[%c0_7, %c0_8], %6 {strides = array<i32>} : memref<8x128xf32, #tpu.memory_space<vmem>>, vector<8x128xf32>,
    return
  }
  func.func @transform_0(%arg0: i32) -> (i32, i32, i32) {
    %c0_i32 = arith.constant 0 : i32
    %c0_i32_0 = arith.constant 0 : i32
    %c0_i32_1 = arith.constant 0 : i32
    return %arg0, %c0_i32, %c0_i32_0 : i32, i32, i32
  }
  func.func @transform_1(%arg0: i32) -> (i32, i32) {
    %c0_i32 = arith.constant 0 : i32
    %c0_i32_0 = arith.constant 0 : i32
    %c0_i32_1 = arith.constant 0 : i32
    return %c0_i32, %c0_i32_0 : i32, i32
  }
  func.func @transform_2(%arg0: i32) -> (i32, i32) {
    %c0_i32 = arith.constant 0 : i32
    %c0_i32_0 = arith.constant 0 : i32
    %c0_i32_1 = arith.constant 0 : i32
    return %c0_i32, %c0_i32_0 : i32, i32
  }
  func.func @transform_3(%arg0: i32) -> (i32, i32) {
    %c0_i32 = arith.constant 0 : i32
    %c0_i32_0 = arith.constant 0 : i32
    return %arg0, %c0_i32 : i32, i32
  }
}

module attributes {stable_mosaic.version = 11 : i64} {
  func.func @_pool_linear_kernel(%arg0: i32, %arg1: memref<8x32x64xf32, #tpu.memory_space<vmem>>, %arg2: memref<32x128xf32, #tpu.memory_space<vmem>>, %arg3: memref<1x128xf32, #tpu.memory_space<vmem>>, %arg4: memref<8x128xf32, #tpu.memory_space<vmem>>) attributes {dimension_semantics = [#tpu.dimension_semantics<parallel>], iteration_bounds = array<i64: 2>, scalar_prefetch = 0 : i64, scratch_operands = 0 : i64, tpu.core_type = #tpu.core_type<tc>, window_params = [{transform_indices = @transform_0, window_bounds = array<i64: 8, 32, 64>}, {pipeline_mode = #tpu.pipeline_mode<synchronous>, transform_indices = @transform_1, window_bounds = array<i64: 32, 128>}, {pipeline_mode = #tpu.pipeline_mode<synchronous>, transform_indices = @transform_2, window_bounds = array<i64: 1, 128>}, {transform_indices = @transform_3, window_bounds = array<i64: 8, 128>}]} {
    %c0 = arith.constant 0 : index
    %c0_0 = arith.constant 0 : index
    %c0_1 = arith.constant 0 : index
    %0 = vector.load %arg1[%c0, %c0_0, %c0_1] : memref<8x32x64xf32, #tpu.memory_space<vmem>>, vector<8x32x64xf32>
    %cst = arith.constant dense<0.000000e+00> : vector<8x32xf32>
    %1 = vector.multi_reduction <add>, %0, %cst [2] : vector<8x32x64xf32> to vector<8x32xf32>
    %c0_2 = arith.constant 0 : index
    %c0_3 = arith.constant 0 : index
    %2 = vector.load %arg2[%c0_2, %c0_3] : memref<32x128xf32, #tpu.memory_space<vmem>>, vector<32x128xf32>
    %cst_4 = arith.constant dense<0.000000e+00> : vector<8x128xf32>
    %3 = tpu.matmul %1, %2, %cst_4 {dimension_numbers = #tpu.dot_dimension_numbers<[1], [0], [0], [1], [0, 0, 1, 1], [], []>} : vector<8x32xf32>, vector<32x128xf32>, vector<8x128xf32> -> vector<8x128xf32>
    %c0_5 = arith.constant 0 : index
    %c0_6 = arith.constant 0 : index
    %4 = vector.load %arg3[%c0_5, %c0_6] : memref<1x128xf32, #tpu.memory_space<vmem>>, vector<1x128xf32>
    %5 = vector.broadcast %4 : vector<1x128xf32> to vector<8x128xf32>
    %6 = arith.addf %3, %5 : vector<8x128xf32>
    %c0_7 = arith.constant 0 : index
    %c0_8 = arith.constant 0 : index
    %7 = vector.load %arg4[%c0_7, %c0_8] : memref<8x128xf32, #tpu.memory_space<vmem>>, vector<8x128xf32>
    tpu.vector_store %arg4[%c0_7, %c0_8], %6 {strides = array<i32>} : memref<8x128xf32, #tpu.memory_space<vmem>>, vector<8x128xf32>,
    return
  }
  func.func @transform_0(%arg0: i32) -> (i32, i32, i32) {
    %c0_i32 = arith.constant 0 : i32
    %c0_i32_0 = arith.constant 0 : i32
    %c0_i32_1 = arith.constant 0 : i32
    return %arg0, %c0_i32, %c0_i32_0 : i32, i32, i32
  }
  func.func @transform_1(%arg0: i32) -> (i32, i32) {
    %c0_i32 = arith.constant 0 : i32
    %c0_i32_0 = arith.constant 0 : i32
    %c0_i32_1 = arith.constant 0 : i32
    return %c0_i32, %c0_i32_0 : i32, i32
  }
  func.func @transform_2(%arg0: i32) -> (i32, i32) {
    %c0_i32 = arith.constant 0 : i32
    %c0_i32_0 = arith.constant 0 : i32
    %c0_i32_1 = arith.constant 0 : i32
    return %c0_i32, %c0_i32_0 : i32, i32
  }
  func.func @transform_3(%arg0: i32) -> (i32, i32) {
    %c0_i32 = arith.constant 0 : i32
    %c0_i32_0 = arith.constant 0 : i32
    return %arg0, %c0_i32 : i32, i32
  }
}

</mosaic_0001>

<bundles_post_ra>
// kernel: tpu_custom_call.1
= control target key start
LH: loop header
LB: loop body
LE: loop exit
PB: predicated region body
PF: predicated region fallthrough
CT: control target
= control target key end

     0   :  { %8 = vsyncpa [#allocation3], 0  ;;  %s1363_s0 = inlined_call_operand.hbm [shape: f32[16,32,64], index: 0, kind: input, shape index: {}]   ;;  %s1364_s1 = inlined_call_operand.hbm [shape: f32[32,128], index: 1, kind: input, shape index: {}]   ;;  %s1365_s2 = inlined_call_operand.vmem [shape: f32[1,128], index: 2, kind: input, shape index: {}]   ;;  %s1366_s3 = inlined_call_operand.hbm [shape: f32[16,128], index: 3, kind: output, shape index: {}]  }
   0x1   :  { %10 = vsyncpa [#allocation3 + $0x1], 0 }
   0x2   :  { %11 = vsyncpa [#allocation6], 0 }
   0x3   :  { %12 = vsyncpa [#allocation4], 0 }
   0x4   :  { %14 = vsyncpa [#allocation4 + $0x1], 0  ;;  %s982_s12 = smov 0   ;;  %s984_s13 = smov 0  }
   0x5   :  { %s986_s14 = smov 0   ;;  %s988_s15 = smov 0  }
   0x6 LB: > { %s1003_s16 = sadd.s32 4294967295, %s952_s15   ;;  %s720_s17 = sadd.s32 4294967294, %s952_s15   ;;  %s952_s15 = sphi %s988_s15, %s1386_s15   ;;  %s948_s14 = sphi %s986_s14, %s1385_s14   ;;  %s944_s13 = sphi %s984_s13, %s1384_s13   ;;  %s940_s12 = sphi %s982_s12, %s1383_s12  }
   0x7   : > { %p40_p0 = scmp.ne.s32.totalorder %s944_s13, %s940_s12  ;;  %p1367_p1 = scmp.eq.s32.totalorder %s1003_s16, 0 }
   0x8   : > { %p112_p3 = scmp.eq.s32.totalorder %s720_s17, 1  ;;  %p721_p5 = scmp.ge.s32.totalorder %s952_s15, 1 }
   0x9   : > { %p1012_p4 = por %p1367_p1, %p40_p0  ;;  %p119_p7 = scmp.lt.s32.totalorder %s952_s15, 3 }
   0xa   : > { %p1017_p6 = por %p112_p3, %p40_p0  ;;  %s954_s21 = smov [#allocation5]  }
   0xb   : > { %s1370_s18 = scalar_select %p1012_p4, 1, 0 }
   0xc   : > { %s1371_s19 = scalar_select %p1017_p6, 1, 0 }
   0xd   : > { %p1022_p8 = pnand %p721_p5, %p119_p7  ;;  %s131_s22 = sshll.u32 %s954_s21, 4  ;;  %s1026_s22 = int_to_ptr.vmem [resolvable:$true] %s131_s22 }
   0xe   : > { %s1038_s24 = sadd.s32 1, %s952_s15   ;;  %s27_s25 = sadd.s32 1, %s948_s14 }
   0xf   : > { %s1372_s20 = scalar_select %p1022_p8, 1, 0 }
  0x10   : > { %p770_p9 = pneg %p1022_p8  ;;  %s24_s26 = ssub.s32 %s952_s15, %s1038_s24 }
  0x11   : > { %s824_s29 = scalar_lea.hbm %s1364_s1, 512 }
  0x12   : > { %p1033_p11 = pnand %p770_p9, %p1367_p1  ;;  %p825_p12 = scmp.ne.s32.totalorder %s1364_s1, %s824_s29 }
  0x13   : > { %p831_p5 = scmp.lt.u32.totalorder %s824_s29, %s1364_s1 }
  0x14   : > { %p826_p13 = pneg %p1033_p11 }
  0x16   : > { %p827_p0 = pnand %p826_p13, %p825_p12 }
  0x18   : > { %p828_p3 = pneg %p827_p0 }
  0x1a   : > { %p833_p7 = pnand %p831_p5, %p828_p3 }
  0x1c   : > { %836 = shalt.err (!%p833_p7)
}
  0x1d   : > { %s837_s7 = scalar_lea.vmem %s1026_s22, 512  ;;  %p845_p2 = scmp.lt.s32.totalorder %s1026_s22, %s1026_s22 }
  0x1e   : > { %p838_p9 = scmp.ne.s32.totalorder %s1026_s22, %s837_s7  ;;  %p846_p6 = scmp.lt.s32.totalorder %s837_s7, %s837_s7 }
  0x20   : > { %p840_p10 = pnand %p838_p9, %p826_p13  ;;  %p847_p4 = por %p846_p6, %p845_p2 }
  0x22   : > { %p841_p1 = pneg %p840_p10 }
  0x24   : > { %p848_p8 = pnand %p847_p4, %p841_p1 }
  0x26   : > { %851 = shalt.err (!%p848_p8)
}
  0x27   : > { %s955_s8 = smov 128   ;;  %s956_s9 = smov 8  }
  0x28   : > { %773 = dma.hbm_to_vmem [thread:$0]  (!%p1033_p11), %s1364_s1, 512, %s1026_s22, [#allocation6], %s955_s8, %s955_s8, %s956_s9  }
  0x29   : > { %p25_p1 = scmp.eq.s32.totalorder %s24_s26, 0  ;;  %p34_p2 = scmp.ne.s32.totalorder %s948_s14, %s944_s13 }
  0x2a   : > { %p35_p4 = scmp.eq.s32.totalorder %s952_s15, 0  ;;  %p783_p6 = scmp.lt.s32.totalorder %s952_s15, 2 }
  0x2b   : > { %s1072_s17 = scalar_select %p25_p1, %s948_s14, %s27_s25  }
  0x2c   : > { %p36_p8 = por %p35_p4, %p34_p2  ;;  %p1374_p10 = scmp.eq.s32.totalorder %s1003_s16, 1 }
  0x2d   : > { %s148_s23 = sand.u32 1, %s948_s14   ;;  %s739_s27 = sshll.u32 %s952_s15, 12 }
  0x2e   : > { %p1076_p12 = por %p1374_p10, %p34_p2  ;;  %s724_s28 = sshll.u32 %s148_s23, 8 }
  0x2f   : > { %s1085_s4 = scalar_lea.hbm %s1363_s0, %s739_s27  ;;  %s152_s22 = scalar_lea.vmem [#allocation2], %s724_s28 }
  0x30   : > { %s160_s25 = sshll.u32 %s152_s22, 4  ;;  %p1087_p11 = pnand %p783_p6, %p36_p8  ;;  %s1091_s25 = int_to_ptr.vmem [resolvable:$true] %s160_s25 }
  0x31   : > { %s1093_s5 = scalar_lea.sflag [#allocation3], %s148_s23  ;;  %s852_s6 = scalar_lea.hbm %s1085_s4, 4096 }
  0x32   : > { %p853_p13 = scmp.ne.s32.totalorder %s1085_s4, %s852_s6  ;;  %p854_p0 = pneg %p1087_p11 }
  0x33   : > { %s857_s11 = scalar_lea.hbm %s1363_s0, 8192  ;;  %p858_p7 = scmp.lt.u32.totalorder %s1085_s4, %s1363_s0 }
  0x34   : > { %p855_p3 = pnand %p854_p0, %p853_p13  ;;  %p859_p9 = scmp.lt.u32.totalorder %s857_s11, %s852_s6 }
  0x35   : > { %p861_p2 = scmp.lt.u32.totalorder %s852_s6, %s1085_s4 }
  0x36   : > { %p856_p5 = pneg %p855_p3  ;;  %p860_p1 = por %p859_p9, %p858_p7 }
  0x38   : > { %p862_p4 = por %p861_p2, %p860_p1 }
  0x3a   : > { %p863_p6 = pnand %p862_p4, %p856_p5 }
  0x3c   : > { %866 = shalt.err (!%p863_p6)
}
  0x3d   : > { %s867_s23 = scalar_lea.vmem %s1091_s25, 4096  ;;  %s957_s29 = smov [#allocation2]  }
  0x3e   : > { %p868_p8 = scmp.ne.s32.totalorder %s1091_s25, %s867_s23  ;;  %s872_s30 = sshll.u32 %s957_s29, 4  ;;  %s873_s30 = int_to_ptr.vmem [resolvable:$false] %s872_s30 }
  0x3f   : > { %s874_s22 = scalar_lea.vmem %s873_s30, 8192  ;;  %p875_p3 = scmp.lt.s32.totalorder %s1091_s25, %s873_s30 }
  0x40   : > { %p870_p10 = pnand %p868_p8, %p854_p0  ;;  %p876_p7 = scmp.lt.s32.totalorder %s874_s22, %s867_s23 }
  0x42   : > { %p871_p13 = pneg %p870_p10  ;;  %p877_p9 = por %p876_p7, %p875_p3 }
  0x44   : > { %p878_p1 = pnand %p877_p9, %p871_p13 }
  0x46   : > { %881 = shalt.err (!%p878_p1)
}
  0x47   : > { %777 = dma.hbm_to_vmem [thread:$0]  (!%p1087_p11), %s1085_s4, 4096, %s1091_s25, %s1093_s5, %s955_s8, %s955_s8, %s956_s9  }
  0x48   : > { %p1377_p0 = scmp.ne.s32.totalorder %s1372_s20, 0 }
  0x49   : > { %s1127_s6 = sand.u32 (!%p1377_p0), 1, %s944_s13   ;;  %p1378_p5 = scmp.ne.s32.totalorder (!%p1377_p0), %s1370_s18, 0 }
  0x4a   : > { %172 = sbr.rel (%p1377_p0) target bundleno = 523 (0x20b), region = 32  ;;  %s729_s7 = sshll.u32 (!%p1377_p0), %s1127_s6, 8 }
  0x4b   : > { %s175_s10 = scalar_lea.sflag (!%p1377_p0), [#allocation3], %s1127_s6  ;;  %s1131_s11 = scalar_lea.vmem (!%p1377_p0), [#allocation2], %s729_s7 }
  0x51   : > { %927 = dma.done.wait (%p1378_p5), %s175_s10, 4096  }
  0x52   : > { %929 = vsyncadd (%p1378_p5), %s175_s10, 4294963200  ;;  %p1379_p11 = scmp.eq.s32.totalorder %s1003_s16, 0 }
  0x54   : > { %931 = dma.done.wait (%p1379_p11), [#allocation6], 512   ;;  %p1380_p2 = pmov %p1379_p11 }
  0x55   : > { %vm238_vm0 = vcmask 523264   ;;  %v210_v0 = vld [vmem:[%s1131_s11 + $0x20] sm:$0xff]  ;;  %v211_v2 = vld [vmem:[%s1131_s11 + $0x28] sm:$0xff]  ;;  %v212_v8 = vld [vmem:[%s1131_s11 + $0x30] sm:$0xff]  ;;  %vm959_vm1 = vmmov 0   ;;  %vm389_vm2 = vcmask 130112  }
  0x56   : > { %933 = vsyncadd (%p1380_p2), [#allocation6], 4294966784  ;;  %v206_v1 = vld [vmem:[%s1131_s11] sm:$0xff]  ;;  %v251_v3 = vsel %vm238_vm0, %v210_v0, 0.0  ;;  %v207_v5 = vld [vmem:[%s1131_s11 + $0x8] sm:$0xff]  ;;  %v254_v6 = vsel %vm238_vm0, %v211_v2, 0.0 }
  0x57   : > { %v239_v4 = vsel %vm238_vm0, %v206_v1, 0.0  ;;  %252 = vadd.xlane.f32.xlu1 %v251_v3  ;;  %v242_v7 = vsel %vm238_vm0, %v207_v5, 0.0  ;;  %v208_v9 = vld [vmem:[%s1131_s11 + $0x10] sm:$0xff]  ;;  %v257_v10 = vsel %vm238_vm0, %v212_v8, 0.0  ;;  %v215_v12 = vld [vmem:[%s1131_s11 + $0x48] sm:$0xff]  ;;  %v214_v13 = vld [vmem:[%s1131_s11 + $0x40] sm:$0xff] }
  0x58   : > { %240 = vadd.xlane.f32.xlu0 %v239_v4  ;;  %v245_v11 = vsel %vm238_vm0, %v208_v9, 0.0  ;;  %v266_v14 = vsel %vm238_vm0, %v215_v12, 0.0  ;;  %v263_v15 = vsel %vm238_vm0, %v214_v13, 0.0  ;;  %v213_v16 = vld [vmem:[%s1131_s11 + $0x38] sm:$0xff]  ;;  %v218_v20 = vld [vmem:[%s1131_s11 + $0x60] sm:$0xff]  ;;  %v216_v21 = vld [vmem:[%s1131_s11 + $0x50] sm:$0xff] }
  0x59   : > { %v209_v17 = vld [vmem:[%s1131_s11 + $0x18] sm:$0xff]  ;;  %v260_v18 = vsel %vm238_vm0, %v213_v16, 0.0  ;;  %v275_v22 = vsel %vm238_vm0, %v218_v20, 0.0  ;;  %v269_v23 = vsel %vm238_vm0, %v216_v21, 0.0  ;;  %v219_v25 = vld [vmem:[%s1131_s11 + $0x68] sm:$0xff]  ;;  %v222_v28 = vld [vmem:[%s1131_s11 + $0x80] sm:$0xff] }
  0x5a   : > { %v248_v19 = vsel %vm238_vm0, %v209_v17, 0.0  ;;  %v217_v24 = vld [vmem:[%s1131_s11 + $0x58] sm:$0xff]  ;;  %v278_v27 = vsel %vm238_vm0, %v219_v25, 0.0  ;;  %v220_v29 = vld [vmem:[%s1131_s11 + $0x70] sm:$0xff]  ;;  %v287_v30 = vsel %vm238_vm0, %v222_v28, 0.0  ;;  %v223_v33 = vld [vmem:[%s1131_s11 + $0x88] sm:$0xff] }
  0x5b   : > { %255 = vadd.xlane.f32.xlu1 %v254_v6  ;;  %v272_v26 = vsel %vm238_vm0, %v217_v24, 0.0  ;;  %v281_v31 = vsel %vm238_vm0, %v220_v29, 0.0  ;;  %v221_v32 = vld [vmem:[%s1131_s11 + $0x78] sm:$0xff]  ;;  %v290_v35 = vsel %vm238_vm0, %v223_v33, 0.0  ;;  %v226_v36 = vld [vmem:[%s1131_s11 + $0xa0] sm:$0xff]  ;;  %v224_v37 = vld [vmem:[%s1131_s11 + $0x90] sm:$0xff]  ;;  %v378_v24 = vlaneseq }
  0x5c   : > { %243 = vadd.xlane.f32.xlu0 %v242_v7  ;;  %v284_v34 = vsel %vm238_vm0, %v221_v32, 0.0  ;;  %v299_v38 = vsel %vm238_vm0, %v226_v36, 0.0  ;;  %v293_v39 = vsel %vm238_vm0, %v224_v37, 0.0  ;;  %v225_v40 = vld [vmem:[%s1131_s11 + $0x98] sm:$0xff]  ;;  %v227_v41 = vld [vmem:[%s1131_s11 + $0xa8] sm:$0xff]  ;;  %v230_v44 = vld [vmem:[%s1131_s11 + $0xc0] sm:$0xff] }
  0x5d   : > { %v296_v42 = vsel %vm238_vm0, %v225_v40, 0.0  ;;  %v302_v43 = vsel %vm238_vm0, %v227_v41, 0.0  ;;  %v228_v45 = vld [vmem:[%s1131_s11 + $0xb0] sm:$0xff]  ;;  %v311_v46 = vsel %vm238_vm0, %v230_v44, 0.0  ;;  %v229_v48 = vld [vmem:[%s1131_s11 + $0xb8] sm:$0xff]  ;;  %v231_v49 = vld [vmem:[%s1131_s11 + $0xc8] sm:$0xff] }
  0x5e   : > { %v305_v47 = vsel %vm238_vm0, %v228_v45, 0.0  ;;  %v308_v50 = vsel %vm238_vm0, %v229_v48, 0.0  ;;  %v314_v51 = vsel %vm238_vm0, %v231_v49, 0.0  ;;  %v234_v52 = vld [vmem:[%s1131_s11 + $0xe0] sm:$0xff]  ;;  %v232_v53 = vld [vmem:[%s1131_s11 + $0xd0] sm:$0xff]  ;;  %v233_v56 = vld [vmem:[%s1131_s11 + $0xd8] sm:$0xff] }
  0x5f   : > { %258 = vadd.xlane.f32.xlu1 %v257_v10  ;;  %v323_v54 = vsel %vm238_vm0, %v234_v52, 0.0  ;;  %v317_v55 = vsel %vm238_vm0, %v232_v53, 0.0  ;;  %v235_v57 = vld [vmem:[%s1131_s11 + $0xe8] sm:$0xff]  ;;  %v320_v58 = vsel %vm238_vm0, %v233_v56, 0.0  ;;  %v236_v60 = vld [vmem:[%s1131_s11 + $0xf0] sm:$0xff]  ;;  %v237_v61 = vld [vmem:[%s1131_s11 + $0xf8] sm:$0xff] }
  0x60   : > { %246 = vadd.xlane.f32.xlu0 %v245_v11  ;;  %v326_v59 = vsel %vm238_vm0, %v235_v57, 0.0  ;;  %v329_v62 = vsel %vm238_vm0, %v236_v60, 0.0  ;;  %v332_v63 = vsel %vm238_vm0, %v237_v61, 0.0  ;;  %v335_v0 = vld [vmem:[#allocation5] sm:$0xff]  ;;  %v336_v1 = vld [vmem:[#allocation5 + $0x8] sm:$0xff]  ;;  %v958_v3 = vmov 0.0|0.0  }
  0x61   : > { %v757_v2 = vpack.c.bf16 %v336_v1, %v335_v0  ;;  %756 = vmatprep.subr.bf16.mxu0 %v958_v3  ;;  %v337_v4 = vld [vmem:[#allocation5 + $0x10] sm:$0xff]  ;;  %v338_v5 = vld [vmem:[#allocation5 + $0x18] sm:$0xff]  ;;  %v960_v7 = vmov 0.0   ;;  %vm396_vm3 = vcmask 195712   ;;  %vm403_vm4 = vcmask 261312   ;;  %s731_s18 = sshll.u32 %s1127_s6, 3 }
  0x62   : > { %v760_v6 = vpack.c.bf16 %v338_v5, %v337_v4  ;;  %753 = vmatprep.mubr.msk.f32.mxu0 %vm959_vm1, %v960_v7  ;;  %vm538_vm5 = vcmask 1041409   ;;  %vm540_vm6 = vcmask 1042434   ;;  %vm542_vm7 = vcmask 1043459   ;;  %s735_s9 = sshll.u32 %s1003_s16, 7  ;;  %s204_s4 = scalar_lea.vmem [#allocation7], %s731_s18 }
  0x63   : > { %267 = vadd.xlane.f32.xlu1 %v266_v14  ;;  %758 = vmatpush3.bf16.msra.mxu0 %v757_v2  ;;  %vm544_vm8 = vcmask 1044484   ;;  %vm546_vm9 = vcmask 1045509   ;;  %vm548_vm10 = vcmask 1046534   ;;  %vm550_vm11 = vcmask 1047559   ;;  %s640_s25 = sshll.u32 %s204_s4, 4  ;;  %s1319_s27 = scalar_lea.hbm %s1366_s3, %s735_s9  ;;  %s1321_s25 = int_to_ptr.vmem [resolvable:$true] %s640_s25 }
  0x64   : > { %264 = vadd.xlane.f32.xlu0 %v263_v15  ;;  %759 = vmatprep.subr.bf16.mxu0 %v958_v3  ;;  %vm552_vm12 = vcmask 261120   ;;  %s627_s28 = scalar_lea.sflag [#allocation4], %s1127_s6  ;;  %s882_s23 = scalar_lea.vmem %s1321_s25, 128 }
  0x65   : > { %p883_p4 = scmp.ne.s32.totalorder %s1321_s25, %s882_s23  ;;  %s961_s16 = smov [#allocation7]  }
  0x66   : > { %s886_s29 = sshll.u32 %s961_s16, 4  ;;  %s887_s29 = int_to_ptr.vmem [resolvable:$false] %s886_s29 }
  0x67   : > { %261 = vadd.xlane.f32.xlu1 %v260_v18  ;;  %761 = vmatpush3.bf16.msra.mxu0 %v760_v6  ;;  %p884_p6 = pnand %p883_p4, %p1076_p12  ;;  %s888_s30 = scalar_lea.vmem %s887_s29, 256 }
  0x68   : > { %249 = vadd.xlane.f32.xlu0 %v248_v19  ;;  %p889_p10 = scmp.lt.s32.totalorder %s1321_s25, %s887_s29  ;;  %p890_p13 = scmp.lt.s32.totalorder %s888_s30, %s882_s23 }
  0x69   : > { %p885_p8 = pneg %p884_p6 }
  0x6a   : > { %p891_p3 = por %p890_p13, %p889_p10 }
  0x6b   : > { %276 = vadd.xlane.f32.xlu1 %v275_v22 }
  0x6c   : > { %270 = vadd.xlane.f32.xlu0 %v269_v23  ;;  %p892_p7 = pnand %p891_p3, %p885_p8 }
  0x6f   : > { %273 = vadd.xlane.f32.xlu1 %v272_v26 }
  0x70   : > { %279 = vadd.xlane.f32.xlu0 %v278_v27  ;;  %v379_v27 = vand.u32 127, %v378_v24 }
  0x72   : > { %v391_v32 = vadd.s32 4294967280, %v379_v27  ;;  %v398_v33 = vadd.s32 4294967272, %v379_v27 }
  0x73   : > { %288 = vadd.xlane.f32.xlu1 %v287_v30  ;;  %v384_v30 = vadd.s32 4294967288, %v379_v27 }
  0x74   : > { %282 = vadd.xlane.f32.xlu0 %v281_v31  ;;  %v381_v31 = vshrl.u32 %v378_v24, 7 }
  0x76   : > { %v1225_v36 = vsub.s32 %v384_v30, %v381_v31  ;;  %v1227_v37 = vsub.s32 %v379_v27, %v381_v31 }
  0x77   : > { %285 = vadd.xlane.f32.xlu1 %v284_v34 }
  0x78   : > { %291 = vadd.xlane.f32.xlu0 %v290_v35 }
  0x7b   : > { %300 = vadd.xlane.f32.xlu1 %v299_v38  ;;  %v1229_v38 = vsub.s32 %v391_v32, %v381_v31 }
  0x7c   : > { %294 = vadd.xlane.f32.xlu0 %v293_v39  ;;  %v1231_v39 = vsub.s32 %v398_v33, %v381_v31 }
  0x7f   : > { %297 = vadd.xlane.f32.xlu1 %v296_v42 }
  0x80   : > { %303 = vadd.xlane.f32.xlu0 %v302_v43 }
  0x83   : > { %312 = vadd.xlane.f32.xlu1 %v311_v46 }
  0x84   : > { %306 = vadd.xlane.f32.xlu0 %v305_v47 }
  0x87   : > { %309 = vadd.xlane.f32.xlu1 %v308_v50 }
  0x88   : > { %315 = vadd.xlane.f32.xlu0 %v314_v51 }
  0x8b   : > { %324 = vadd.xlane.f32.xlu1 %v323_v54 }
  0x8c   : > { %318 = vadd.xlane.f32.xlu0 %v317_v55 }
  0x8f   : > { %321 = vadd.xlane.f32.xlu1 %v320_v58 }
  0x90   : > { %327 = vadd.xlane.f32.xlu0 %v326_v59 }
  0x93   : > { %333 = vadd.xlane.f32.xlu1 %v332_v63 }
  0x94   : > { %330 = vadd.xlane.f32.xlu0 %v329_v62 }
  0xe4   : > { %v253_v8 = vpop.xlane.xlu1 %252 }
  0xe5   : > { %v241_v9 = vpop.xlane.xlu0 %240  ;;  %v408_v44 = vrot.slane %v253_v8, %v1227_v37 }
  0xe6   : > { %v383_v45 = vrot.slane %v241_v9, %v1227_v37 }
  0xe8   : > { %v256_v10 = vpop.xlane.xlu1 %255 }
  0xe9   : > { %v244_v11 = vpop.xlane.xlu0 %243  ;;  %v412_v42 = vrot.slane %v256_v10, %v1225_v36 }
  0xea   : > { %v388_v43 = vrot.slane %v244_v11, %v1225_v36 }
  0xeb   : > { %v413_v55 = vsel %vm389_vm2, %v412_v42, %v408_v44 }
  0xec   : > { %v259_v12 = vpop.xlane.xlu1 %258  ;;  %v390_v56 = vsel %vm389_vm2, %v388_v43, %v383_v45 }
  0xed   : > { %v247_v13 = vpop.xlane.xlu0 %246  ;;  %v417_v46 = vrot.slane %v259_v12, %v1229_v38 }
  0xee   : > { %v395_v47 = vrot.slane %v247_v13, %v1229_v38 }
  0xef   : > { %v418_v58 = vsel %vm396_vm3, %v417_v46, %v413_v55 }
  0xf0   : > { %v268_v14 = vpop.xlane.xlu1 %267  ;;  %v397_v59 = vsel %vm396_vm3, %v395_v47, %v390_v56 }
  0xf1   : > { %v265_v15 = vpop.xlane.xlu0 %264  ;;  %v431_v48 = vrot.slane %v268_v14, %v1225_v36 }
  0xf2   : > { %v427_v49 = vrot.slane %v265_v15, %v1227_v37 }
  0xf4   : > { %v262_v16 = vpop.xlane.xlu1 %261  ;;  %v432_v60 = vsel %vm389_vm2, %v431_v48, %v427_v49 }
  0xf5   : > { %v250_v17 = vpop.xlane.xlu0 %249  ;;  %v422_v50 = vrot.slane %v262_v16, %v1231_v39 }
  0xf6   : > { %v402_v51 = vrot.slane %v250_v17, %v1231_v39 }
  0xf7   : > { %v423_v61 = vsel %vm403_vm4, %v422_v50, %v418_v58 }
  0xf8   : > { %v1205_v18 = vpop.xlane.xlu1 %276  ;;  %v404_v62 = vsel %vm403_vm4, %v402_v51, %v397_v59 }
  0xf9   : > { %v271_v19 = vpop.xlane.xlu0 %270  ;;  %v446_v2 = vrot.slane %v1205_v18, %v1227_v37 }
  0xfa   : > { %v436_v54 = vrot.slane %v271_v19, %v1229_v38 }
  0xfc   : > { %v274_v20 = vpop.xlane.xlu1 %273  ;;  %v437_v3 = vsel %vm396_vm3, %v436_v54, %v432_v60 }
  0xfd   : > { %v1207_v21 = vpop.xlane.xlu0 %279  ;;  %v441_v57 = vrot.slane %v274_v20, %v1231_v39 }
  0xfe   : > { %v450_v63 = vrot.slane %v1207_v21, %v1225_v36 }
  0xff   : > { %v442_v6 = vsel %vm403_vm4, %v441_v57, %v437_v3 }
 0x100   : > { %v1209_v22 = vpop.xlane.xlu1 %288  ;;  %v451_v14 = vsel %vm389_vm2, %v450_v63, %v446_v2 }
 0x101   : > { %v1211_v23 = vpop.xlane.xlu0 %282  ;;  %v465_v10 = vrot.slane %v1209_v22, %v1227_v37 }
 0x102   : > { %v455_v4 = vrot.slane %v1211_v23, %v1229_v38 }
 0x104   : > { %v1213_v25 = vpop.xlane.xlu1 %285  ;;  %v456_v20 = vsel %vm396_vm3, %v455_v4, %v451_v14 }
 0x105   : > { %v1215_v26 = vpop.xlane.xlu0 %291  ;;  %v460_v7 = vrot.slane %v1213_v25, %v1231_v39 }
 0x106   : > { %v469_v5 = vrot.slane %v1215_v26, %v1225_v36 }
 0x107   : > { %v461_v24 = vsel %vm403_vm4, %v460_v7, %v456_v20 }
 0x108   : > { %v1217_v28 = vpop.xlane.xlu1 %300  ;;  %v470_v21 = vsel %vm389_vm2, %v469_v5, %v465_v10 }
 0x109   : > { %v1219_v29 = vpop.xlane.xlu0 %294  ;;  %v484_v15 = vrot.slane %v1217_v28, %v1227_v37  ;;  %v539_v28 = vsel %vm538_vm5, %v423_v61, %v404_v62 }
 0x10a   : > { %v474_v8 = vrot.slane %v1219_v29, %v1229_v38  ;;  %v541_v32 = vsel %vm540_vm6, %v442_v6, %v539_v28 }
 0x10c   : > { %v1221_v34 = vpop.xlane.xlu1 %297  ;;  %v475_v25 = vsel %vm396_vm3, %v474_v8, %v470_v21 }
 0x10d   : > { %v1223_v35 = vpop.xlane.xlu0 %303  ;;  %v479_v11 = vrot.slane %v1221_v34, %v1231_v39 }
 0x10e   : > { %v488_v9 = vrot.slane %v1223_v35, %v1225_v36 }
 0x10f   : > { %v480_v29 = vsel %vm403_vm4, %v479_v11, %v475_v25 }
 0x110   : > { %v1233_v40 = vpop.xlane.xlu1 %312  ;;  %v489_v26 = vsel %vm389_vm2, %v488_v9, %v484_v15 }
 0x111   : > { %v1235_v41 = vpop.xlane.xlu0 %306  ;;  %v503_v22 = vrot.slane %v1233_v40, %v1227_v37 }
 0x112   : > { %v493_v12 = vrot.slane %v1235_v41, %v1229_v38 }
 0x114   : > { %v310_v52 = vpop.xlane.xlu1 %309  ;;  %v494_v30 = vsel %vm396_vm3, %v493_v12, %v489_v26 }
 0x115   : > { %v316_v53 = vpop.xlane.xlu0 %315  ;;  %v498_v16 = vrot.slane %v310_v52, %v1231_v39 }
 0x116   : > { %v507_v13 = vrot.slane %v316_v53, %v1225_v36 }
 0x117   : > { %v499_v33 = vsel %vm403_vm4, %v498_v16, %v494_v30 }
 0x118   : > { %v325_v0 = vpop.xlane.xlu1 %324  ;;  %v508_v31 = vsel %vm389_vm2, %v507_v13, %v503_v22 }
 0x119   : > { %v319_v1 = vpop.xlane.xlu0 %318  ;;  %v522_v34 = vrot.slane %v325_v0, %v1227_v37 }
 0x11a   : > { %v512_v17 = vrot.slane %v319_v1, %v1229_v38 }
 0x11c   : > { %v322_v18 = vpop.xlane.xlu1 %321  ;;  %v513_v35 = vsel %vm396_vm3, %v512_v17, %v508_v31 }
 0x11d   : > { %v328_v19 = vpop.xlane.xlu0 %327  ;;  %v517_v23 = vrot.slane %v322_v18, %v1231_v39 }
 0x11e   : > { %v526_v27 = vrot.slane %v328_v19, %v1225_v36  ;;  %v543_v36 = vsel %vm542_vm7, %v461_v24, %v541_v32 }
 0x11f   : > { %v518_v42 = vsel %vm403_vm4, %v517_v23, %v513_v35  ;;  %v545_v45 = vsel %vm544_vm8, %v480_v29, %v543_v36 }
 0x120   : > { %v334_v41 = vpop.xlane.xlu1 %333  ;;  %v527_v46 = vsel %vm389_vm2, %v526_v27, %v522_v34  ;;  %v547_v37 = vsel %vm546_vm9, %v499_v33, %v545_v45 }
 0x121   : > { %v331_v40 = vpop.xlane.xlu0 %330  ;;  %v536_v44 = vrot.slane %v334_v41, %v1231_v39  ;;  %v549_v49 = vsel %vm548_vm10, %v518_v42, %v547_v37 }
 0x122   : > { %v531_v43 = vrot.slane %v331_v40, %v1229_v38  ;;  %v732_v38 = vld [vmem:[%s1365_s2] ss:$0 sm:$0xff] }
 0x124   : > { %v532_v47 = vsel %vm396_vm3, %v531_v43, %v527_v46 }
 0x125   : > { %v537_v48 = vsel %vm403_vm4, %v536_v44, %v532_v47 }
 0x126   : > { %v551_v50 = vsel %vm550_vm11, %v537_v48, %v549_v49 }
 0x127   : > { %754 = vmatmul.mubr.msk.f32.vlgmr.msra.gmra.mrb[0].mxu0 %vm552_vm12, %v551_v50 }
 0x1fa   : > { %v621_v39 = vpop.f32.mrb[0].mxu0 }
 0x1fb   : > { %v622_v51 = vadd.f32 %v732_v38, %v621_v39  ;;  %v755_v52 = vpop.f32.mrb[1].mxu0 }
 0x1fd   : > { %625 = vst [vmem:[%s204_s4] sm:$0xff] %v622_v51 }
 0x1fe   : > { %895 = shalt.err (!%p892_p7)
}
 0x1ff   : > { %s896_s22 = scalar_lea.hbm %s1319_s27, 128  ;;  %s900_s10 = scalar_lea.hbm %s1366_s3, 256 }
 0x200   : > { %p897_p9 = scmp.ne.s32.totalorder %s1319_s27, %s896_s22  ;;  %p901_p5 = scmp.lt.u32.totalorder %s1319_s27, %s1366_s3 }
 0x201   : > { %p902_p11 = scmp.lt.u32.totalorder %s900_s10, %s896_s22  ;;  %p904_p4 = scmp.lt.u32.totalorder %s896_s22, %s1319_s27 }
 0x202   : > { %p898_p1 = pnand %p897_p9, %p1076_p12 }
 0x203   : > { %p903_p2 = por %p902_p11, %p901_p5 }
 0x204   : > { %p899_p0 = pneg %p898_p1 }
 0x205   : > { %p905_p6 = por %p904_p4, %p903_p2 }
 0x207   : > { %p906_p8 = pnand %p905_p6, %p899_p0 }
 0x209   : > { %909 = shalt.err (!%p906_p8)
}
 0x20a   : > { %768 = dma.vmem_to_hbm [thread:$0]  (%p1076_p12), %s1321_s25, 128, %s1319_s27, %s627_s28  }
 0x20b PF: > { %s652_s20 = sand.u32 1, %s940_s12   ;;  %p1381_p10 = scmp.ne.s32.totalorder %s1371_s19, 0 }
 0x20c   : > { %p1382_p13 = scmp.ge.s32.totalorder %s952_s15, 2  ;;  %s653_s8 = scalar_lea.sflag [#allocation4], %s652_s20 }
 0x20e   : > { %p779_p3 = pnand %p1382_p13, %p1381_p10 }
 0x210   : > { %935 = dma.done.wait (!%p779_p3), %s653_s8, 128  }
 0x211   : > { %937 = vsyncadd (!%p779_p3), %s653_s8, 4294967168  ;;  %p17_p7 = scmp.ge.s32.totalorder %s1038_s24, 4   ;;  %s1383_s12 = smov %s944_s13 }
 0x212   : > { %s1384_s13 = smov %s948_s14  ;;  %s1385_s14 = smov %s1072_s17 }
 0x213   : > { %s1386_s15 = smov %s1038_s24  ;;  %19 = sbr.rel (!%p17_p7) target bundleno = 6 (0x6), region = 81 }
 0x21a   :  { %658 = vsyncpa [#allocation3], 1 }
 0x21b   :  { %660 = vsyncpa [#allocation3 + $0x1], 1 }
 0x21c   :  { %661 = vsyncpa [#allocation6], 1 }
 0x21d   :  { %662 = vsyncpa [#allocation4], 1 }
 0x21e   :  { %664 = vsyncpa [#allocation4 + $0x1], 1 }

// kernel: tpu_custom_call.1
= control target key start
LH: loop header
LB: loop body
LE: loop exit
PB: predicated region body
PF: predicated region fallthrough
CT: control target
= control target key end

     0   :  { %8 = vsyncpa [#allocation3], 0  ;;  %s1363_s0 = inlined_call_operand.hbm [shape: f32[16,32,64], index: 0, kind: input, shape index: {}]   ;;  %s1364_s1 = inlined_call_operand.hbm [shape: f32[32,128], index: 1, kind: input, shape index: {}]   ;;  %s1365_s2 = inlined_call_operand.vmem [shape: f32[1,128], index: 2, kind: input, shape index: {}]   ;;  %s1366_s3 = inlined_call_operand.hbm [shape: f32[16,128], index: 3, kind: output, shape index: {}]  }
   0x1   :  { %10 = vsyncpa [#allocation3 + $0x1], 0 }
   0x2   :  { %11 = vsyncpa [#allocation6], 0 }
   0x3   :  { %12 = vsyncpa [#allocation4], 0 }
   0x4   :  { %14 = vsyncpa [#allocation4 + $0x1], 0  ;;  %s982_s12 = smov 0   ;;  %s984_s13 = smov 0  }
   0x5   :  { %s986_s14 = smov 0   ;;  %s988_s15 = smov 0  }
   0x6 LB: > { %s1003_s16 = sadd.s32 4294967295, %s952_s15   ;;  %s720_s17 = sadd.s32 4294967294, %s952_s15   ;;  %s952_s15 = sphi %s988_s15, %s1386_s15   ;;  %s948_s14 = sphi %s986_s14, %s1385_s14   ;;  %s944_s13 = sphi %s984_s13, %s1384_s13   ;;  %s940_s12 = sphi %s982_s12, %s1383_s12  }
   0x7   : > { %p40_p0 = scmp.ne.s32.totalorder %s944_s13, %s940_s12  ;;  %p1367_p1 = scmp.eq.s32.totalorder %s1003_s16, 0 }
   0x8   : > { %p112_p3 = scmp.eq.s32.totalorder %s720_s17, 1  ;;  %p721_p5 = scmp.ge.s32.totalorder %s952_s15, 1 }
   0x9   : > { %p1012_p4 = por %p1367_p1, %p40_p0  ;;  %p119_p7 = scmp.lt.s32.totalorder %s952_s15, 3 }
   0xa   : > { %p1017_p6 = por %p112_p3, %p40_p0  ;;  %s954_s21 = smov [#allocation5]  }
   0xb   : > { %s1370_s18 = scalar_select %p1012_p4, 1, 0 }
   0xc   : > { %s1371_s19 = scalar_select %p1017_p6, 1, 0 }
   0xd   : > { %p1022_p8 = pnand %p721_p5, %p119_p7  ;;  %s131_s22 = sshll.u32 %s954_s21, 4  ;;  %s1026_s22 = int_to_ptr.vmem [resolvable:$true] %s131_s22 }
   0xe   : > { %s1038_s24 = sadd.s32 1, %s952_s15   ;;  %s27_s25 = sadd.s32 1, %s948_s14 }
   0xf   : > { %s1372_s20 = scalar_select %p1022_p8, 1, 0 }
  0x10   : > { %p770_p9 = pneg %p1022_p8  ;;  %s24_s26 = ssub.s32 %s952_s15, %s1038_s24 }
  0x11   : > { %s824_s29 = scalar_lea.hbm %s1364_s1, 512 }
  0x12   : > { %p1033_p11 = pnand %p770_p9, %p1367_p1  ;;  %p825_p12 = scmp.ne.s32.totalorder %s1364_s1, %s824_s29 }
  0x13   : > { %p831_p5 = scmp.lt.u32.totalorder %s824_s29, %s1364_s1 }
  0x14   : > { %p826_p13 = pneg %p1033_p11 }
  0x16   : > { %p827_p0 = pnand %p826_p13, %p825_p12 }
  0x18   : > { %p828_p3 = pneg %p827_p0 }
  0x1a   : > { %p833_p7 = pnand %p831_p5, %p828_p3 }
  0x1c   : > { %836 = shalt.err (!%p833_p7)
}
  0x1d   : > { %s837_s7 = scalar_lea.vmem %s1026_s22, 512  ;;  %p845_p2 = scmp.lt.s32.totalorder %s1026_s22, %s1026_s22 }
  0x1e   : > { %p838_p9 = scmp.ne.s32.totalorder %s1026_s22, %s837_s7  ;;  %p846_p6 = scmp.lt.s32.totalorder %s837_s7, %s837_s7 }
  0x20   : > { %p840_p10 = pnand %p838_p9, %p826_p13  ;;  %p847_p4 = por %p846_p6, %p845_p2 }
  0x22   : > { %p841_p1 = pneg %p840_p10 }
  0x24   : > { %p848_p8 = pnand %p847_p4, %p841_p1 }
  0x26   : > { %851 = shalt.err (!%p848_p8)
}
  0x27   : > { %s955_s8 = smov 128   ;;  %s956_s9 = smov 8  }
  0x28   : > { %773 = dma.hbm_to_vmem [thread:$0]  (!%p1033_p11), %s1364_s1, 512, %s1026_s22, [#allocation6], %s955_s8, %s955_s8, %s956_s9  }
  0x29   : > { %p25_p1 = scmp.eq.s32.totalorder %s24_s26, 0  ;;  %p34_p2 = scmp.ne.s32.totalorder %s948_s14, %s944_s13 }
  0x2a   : > { %p35_p4 = scmp.eq.s32.totalorder %s952_s15, 0  ;;  %p783_p6 = scmp.lt.s32.totalorder %s952_s15, 2 }
  0x2b   : > { %s1072_s17 = scalar_select %p25_p1, %s948_s14, %s27_s25  }
  0x2c   : > { %p36_p8 = por %p35_p4, %p34_p2  ;;  %p1374_p10 = scmp.eq.s32.totalorder %s1003_s16, 1 }
  0x2d   : > { %s148_s23 = sand.u32 1, %s948_s14   ;;  %s739_s27 = sshll.u32 %s952_s15, 12 }
  0x2e   : > { %p1076_p12 = por %p1374_p10, %p34_p2  ;;  %s724_s28 = sshll.u32 %s148_s23, 8 }
  0x2f   : > { %s1085_s4 = scalar_lea.hbm %s1363_s0, %s739_s27  ;;  %s152_s22 = scalar_lea.vmem [#allocation2], %s724_s28 }
  0x30   : > { %s160_s25 = sshll.u32 %s152_s22, 4  ;;  %p1087_p11 = pnand %p783_p6, %p36_p8  ;;  %s1091_s25 = int_to_ptr.vmem [resolvable:$true] %s160_s25 }
  0x31   : > { %s1093_s5 = scalar_lea.sflag [#allocation3], %s148_s23  ;;  %s852_s6 = scalar_lea.hbm %s1085_s4, 4096 }
  0x32   : > { %p853_p13 = scmp.ne.s32.totalorder %s1085_s4, %s852_s6  ;;  %p854_p0 = pneg %p1087_p11 }
  0x33   : > { %s857_s11 = scalar_lea.hbm %s1363_s0, 8192  ;;  %p858_p7 = scmp.lt.u32.totalorder %s1085_s4, %s1363_s0 }
  0x34   : > { %p855_p3 = pnand %p854_p0, %p853_p13  ;;  %p859_p9 = scmp.lt.u32.totalorder %s857_s11, %s852_s6 }
  0x35   : > { %p861_p2 = scmp.lt.u32.totalorder %s852_s6, %s1085_s4 }
  0x36   : > { %p856_p5 = pneg %p855_p3  ;;  %p860_p1 = por %p859_p9, %p858_p7 }
  0x38   : > { %p862_p4 = por %p861_p2, %p860_p1 }
  0x3a   : > { %p863_p6 = pnand %p862_p4, %p856_p5 }
  0x3c   : > { %866 = shalt.err (!%p863_p6)
}
  0x3d   : > { %s867_s23 = scalar_lea.vmem %s1091_s25, 4096  ;;  %s957_s29 = smov [#allocation2]  }
  0x3e   : > { %p868_p8 = scmp.ne.s32.totalorder %s1091_s25, %s867_s23  ;;  %s872_s30 = sshll.u32 %s957_s29, 4  ;;  %s873_s30 = int_to_ptr.vmem [resolvable:$false] %s872_s30 }
  0x3f   : > { %s874_s22 = scalar_lea.vmem %s873_s30, 8192  ;;  %p875_p3 = scmp.lt.s32.totalorder %s1091_s25, %s873_s30 }
  0x40   : > { %p870_p10 = pnand %p868_p8, %p854_p0  ;;  %p876_p7 = scmp.lt.s32.totalorder %s874_s22, %s867_s23 }
  0x42   : > { %p871_p13 = pneg %p870_p10  ;;  %p877_p9 = por %p876_p7, %p875_p3 }
  0x44   : > { %p878_p1 = pnand %p877_p9, %p871_p13 }
  0x46   : > { %881 = shalt.err (!%p878_p1)
}
  0x47   : > { %777 = dma.hbm_to_vmem [thread:$0]  (!%p1087_p11), %s1085_s4, 4096, %s1091_s25, %s1093_s5, %s955_s8, %s955_s8, %s956_s9  }
  0x48   : > { %p1377_p0 = scmp.ne.s32.totalorder %s1372_s20, 0 }
  0x49   : > { %s1127_s6 = sand.u32 (!%p1377_p0), 1, %s944_s13   ;;  %p1378_p5 = scmp.ne.s32.totalorder (!%p1377_p0), %s1370_s18, 0 }
  0x4a   : > { %172 = sbr.rel (%p1377_p0) target bundleno = 523 (0x20b), region = 32  ;;  %s729_s7 = sshll.u32 (!%p1377_p0), %s1127_s6, 8 }
  0x4b   : > { %s175_s10 = scalar_lea.sflag (!%p1377_p0), [#allocation3], %s1127_s6  ;;  %s1131_s11 = scalar_lea.vmem (!%p1377_p0), [#allocation2], %s729_s7 }
  0x51   : > { %927 = dma.done.wait (%p1378_p5), %s175_s10, 4096  }
  0x52   : > { %929 = vsyncadd (%p1378_p5), %s175_s10, 4294963200  ;;  %p1379_p11 = scmp.eq.s32.totalorder %s1003_s16, 0 }
  0x54   : > { %931 = dma.done.wait (%p1379_p11), [#allocation6], 512   ;;  %p1380_p2 = pmov %p1379_p11 }
  0x55   : > { %vm238_vm0 = vcmask 523264   ;;  %v210_v0 = vld [vmem:[%s1131_s11 + $0x20] sm:$0xff]  ;;  %v211_v2 = vld [vmem:[%s1131_s11 + $0x28] sm:$0xff]  ;;  %v212_v8 = vld [vmem:[%s1131_s11 + $0x30] sm:$0xff]  ;;  %vm959_vm1 = vmmov 0   ;;  %vm389_vm2 = vcmask 130112  }
  0x56   : > { %933 = vsyncadd (%p1380_p2), [#allocation6], 4294966784  ;;  %v206_v1 = vld [vmem:[%s1131_s11] sm:$0xff]  ;;  %v251_v3 = vsel %vm238_vm0, %v210_v0, 0.0  ;;  %v207_v5 = vld [vmem:[%s1131_s11 + $0x8] sm:$0xff]  ;;  %v254_v6 = vsel %vm238_vm0, %v211_v2, 0.0 }
  0x57   : > { %v239_v4 = vsel %vm238_vm0, %v206_v1, 0.0  ;;  %252 = vadd.xlane.f32.xlu1 %v251_v3  ;;  %v242_v7 = vsel %vm238_vm0, %v207_v5, 0.0  ;;  %v208_v9 = vld [vmem:[%s1131_s11 + $0x10] sm:$0xff]  ;;  %v257_v10 = vsel %vm238_vm0, %v212_v8, 0.0  ;;  %v215_v12 = vld [vmem:[%s1131_s11 + $0x48] sm:$0xff]  ;;  %v214_v13 = vld [vmem:[%s1131_s11 + $0x40] sm:$0xff] }
  0x58   : > { %240 = vadd.xlane.f32.xlu0 %v239_v4  ;;  %v245_v11 = vsel %vm238_vm0, %v208_v9, 0.0  ;;  %v266_v14 = vsel %vm238_vm0, %v215_v12, 0.0  ;;  %v263_v15 = vsel %vm238_vm0, %v214_v13, 0.0  ;;  %v213_v16 = vld [vmem:[%s1131_s11 + $0x38] sm:$0xff]  ;;  %v218_v20 = vld [vmem:[%s1131_s11 + $0x60] sm:$0xff]  ;;  %v216_v21 = vld [vmem:[%s1131_s11 + $0x50] sm:$0xff] }
  0x59   : > { %v209_v17 = vld [vmem:[%s1131_s11 + $0x18] sm:$0xff]  ;;  %v260_v18 = vsel %vm238_vm0, %v213_v16, 0.0  ;;  %v275_v22 = vsel %vm238_vm0, %v218_v20, 0.0  ;;  %v269_v23 = vsel %vm238_vm0, %v216_v21, 0.0  ;;  %v219_v25 = vld [vmem:[%s1131_s11 + $0x68] sm:$0xff]  ;;  %v222_v28 = vld [vmem:[%s1131_s11 + $0x80] sm:$0xff] }
  0x5a   : > { %v248_v19 = vsel %vm238_vm0, %v209_v17, 0.0  ;;  %v217_v24 = vld [vmem:[%s1131_s11 + $0x58] sm:$0xff]  ;;  %v278_v27 = vsel %vm238_vm0, %v219_v25, 0.0  ;;  %v220_v29 = vld [vmem:[%s1131_s11 + $0x70] sm:$0xff]  ;;  %v287_v30 = vsel %vm238_vm0, %v222_v28, 0.0  ;;  %v223_v33 = vld [vmem:[%s1131_s11 + $0x88] sm:$0xff] }
  0x5b   : > { %255 = vadd.xlane.f32.xlu1 %v254_v6  ;;  %v272_v26 = vsel %vm238_vm0, %v217_v24, 0.0  ;;  %v281_v31 = vsel %vm238_vm0, %v220_v29, 0.0  ;;  %v221_v32 = vld [vmem:[%s1131_s11 + $0x78] sm:$0xff]  ;;  %v290_v35 = vsel %vm238_vm0, %v223_v33, 0.0  ;;  %v226_v36 = vld [vmem:[%s1131_s11 + $0xa0] sm:$0xff]  ;;  %v224_v37 = vld [vmem:[%s1131_s11 + $0x90] sm:$0xff]  ;;  %v378_v24 = vlaneseq }
  0x5c   : > { %243 = vadd.xlane.f32.xlu0 %v242_v7  ;;  %v284_v34 = vsel %vm238_vm0, %v221_v32, 0.0  ;;  %v299_v38 = vsel %vm238_vm0, %v226_v36, 0.0  ;;  %v293_v39 = vsel %vm238_vm0, %v224_v37, 0.0  ;;  %v225_v40 = vld [vmem:[%s1131_s11 + $0x98] sm:$0xff]  ;;  %v227_v41 = vld [vmem:[%s1131_s11 + $0xa8] sm:$0xff]  ;;  %v230_v44 = vld [vmem:[%s1131_s11 + $0xc0] sm:$0xff] }
  0x5d   : > { %v296_v42 = vsel %vm238_vm0, %v225_v40, 0.0  ;;  %v302_v43 = vsel %vm238_vm0, %v227_v41, 0.0  ;;  %v228_v45 = vld [vmem:[%s1131_s11 + $0xb0] sm:$0xff]  ;;  %v311_v46 = vsel %vm238_vm0, %v230_v44, 0.0  ;;  %v229_v48 = vld [vmem:[%s1131_s11 + $0xb8] sm:$0xff]  ;;  %v231_v49 = vld [vmem:[%s1131_s11 + $0xc8] sm:$0xff] }
  0x5e   : > { %v305_v47 = vsel %vm238_vm0, %v228_v45, 0.0  ;;  %v308_v50 = vsel %vm238_vm0, %v229_v48, 0.0  ;;  %v314_v51 = vsel %vm238_vm0, %v231_v49, 0.0  ;;  %v234_v52 = vld [vmem:[%s1131_s11 + $0xe0] sm:$0xff]  ;;  %v232_v53 = vld [vmem:[%s1131_s11 + $0xd0] sm:$0xff]  ;;  %v233_v56 = vld [vmem:[%s1131_s11 + $0xd8] sm:$0xff] }
  0x5f   : > { %258 = vadd.xlane.f32.xlu1 %v257_v10  ;;  %v323_v54 = vsel %vm238_vm0, %v234_v52, 0.0  ;;  %v317_v55 = vsel %vm238_vm0, %v232_v53, 0.0  ;;  %v235_v57 = vld [vmem:[%s1131_s11 + $0xe8] sm:$0xff]  ;;  %v320_v58 = vsel %vm238_vm0, %v233_v56, 0.0  ;;  %v236_v60 = vld [vmem:[%s1131_s11 + $0xf0] sm:$0xff]  ;;  %v237_v61 = vld [vmem:[%s1131_s11 + $0xf8] sm:$0xff] }
  0x60   : > { %246 = vadd.xlane.f32.xlu0 %v245_v11  ;;  %v326_v59 = vsel %vm238_vm0, %v235_v57, 0.0  ;;  %v329_v62 = vsel %vm238_vm0, %v236_v60, 0.0  ;;  %v332_v63 = vsel %vm238_vm0, %v237_v61, 0.0  ;;  %v335_v0 = vld [vmem:[#allocation5] sm:$0xff]  ;;  %v336_v1 = vld [vmem:[#allocation5 + $0x8] sm:$0xff]  ;;  %v958_v3 = vmov 0.0|0.0  }
  0x61   : > { %v757_v2 = vpack.c.bf16 %v336_v1, %v335_v0  ;;  %756 = vmatprep.subr.bf16.mxu0 %v958_v3  ;;  %v337_v4 = vld [vmem:[#allocation5 + $0x10] sm:$0xff]  ;;  %v338_v5 = vld [vmem:[#allocation5 + $0x18] sm:$0xff]  ;;  %v960_v7 = vmov 0.0   ;;  %vm396_vm3 = vcmask 195712   ;;  %vm403_vm4 = vcmask 261312   ;;  %s731_s18 = sshll.u32 %s1127_s6, 3 }
  0x62   : > { %v760_v6 = vpack.c.bf16 %v338_v5, %v337_v4  ;;  %753 = vmatprep.mubr.msk.f32.mxu0 %vm959_vm1, %v960_v7  ;;  %vm538_vm5 = vcmask 1041409   ;;  %vm540_vm6 = vcmask 1042434   ;;  %vm542_vm7 = vcmask 1043459   ;;  %s735_s9 = sshll.u32 %s1003_s16, 7  ;;  %s204_s4 = scalar_lea.vmem [#allocation7], %s731_s18 }
  0x63   : > { %267 = vadd.xlane.f32.xlu1 %v266_v14  ;;  %758 = vmatpush3.bf16.msra.mxu0 %v757_v2  ;;  %vm544_vm8 = vcmask 1044484   ;;  %vm546_vm9 = vcmask 1045509   ;;  %vm548_vm10 = vcmask 1046534   ;;  %vm550_vm11 = vcmask 1047559   ;;  %s640_s25 = sshll.u32 %s204_s4, 4  ;;  %s1319_s27 = scalar_lea.hbm %s1366_s3, %s735_s9  ;;  %s1321_s25 = int_to_ptr.vmem [resolvable:$true] %s640_s25 }
  0x64   : > { %264 = vadd.xlane.f32.xlu0 %v263_v15  ;;  %759 = vmatprep.subr.bf16.mxu0 %v958_v3  ;;  %vm552_vm12 = vcmask 261120   ;;  %s627_s28 = scalar_lea.sflag [#allocation4], %s1127_s6  ;;  %s882_s23 = scalar_lea.vmem %s1321_s25, 128 }
  0x65   : > { %p883_p4 = scmp.ne.s32.totalorder %s1321_s25, %s882_s23  ;;  %s961_s16 = smov [#allocation7]  }
  0x66   : > { %s886_s29 = sshll.u32 %s961_s16, 4  ;;  %s887_s29 = int_to_ptr.vmem [resolvable:$false] %s886_s29 }
  0x67   : > { %261 = vadd.xlane.f32.xlu1 %v260_v18  ;;  %761 = vmatpush3.bf16.msra.mxu0 %v760_v6  ;;  %p884_p6 = pnand %p883_p4, %p1076_p12  ;;  %s888_s30 = scalar_lea.vmem %s887_s29, 256 }
  0x68   : > { %249 = vadd.xlane.f32.xlu0 %v248_v19  ;;  %p889_p10 = scmp.lt.s32.totalorder %s1321_s25, %s887_s29  ;;  %p890_p13 = scmp.lt.s32.totalorder %s888_s30, %s882_s23 }
  0x69   : > { %p885_p8 = pneg %p884_p6 }
  0x6a   : > { %p891_p3 = por %p890_p13, %p889_p10 }
  0x6b   : > { %276 = vadd.xlane.f32.xlu1 %v275_v22 }
  0x6c   : > { %270 = vadd.xlane.f32.xlu0 %v269_v23  ;;  %p892_p7 = pnand %p891_p3, %p885_p8 }
  0x6f   : > { %273 = vadd.xlane.f32.xlu1 %v272_v26 }
  0x70   : > { %279 = vadd.xlane.f32.xlu0 %v278_v27  ;;  %v379_v27 = vand.u32 127, %v378_v24 }
  0x72   : > { %v391_v32 = vadd.s32 4294967280, %v379_v27  ;;  %v398_v33 = vadd.s32 4294967272, %v379_v27 }
  0x73   : > { %288 = vadd.xlane.f32.xlu1 %v287_v30  ;;  %v384_v30 = vadd.s32 4294967288, %v379_v27 }
  0x74   : > { %282 = vadd.xlane.f32.xlu0 %v281_v31  ;;  %v381_v31 = vshrl.u32 %v378_v24, 7 }
  0x76   : > { %v1225_v36 = vsub.s32 %v384_v30, %v381_v31  ;;  %v1227_v37 = vsub.s32 %v379_v27, %v381_v31 }
  0x77   : > { %285 = vadd.xlane.f32.xlu1 %v284_v34 }
  0x78   : > { %291 = vadd.xlane.f32.xlu0 %v290_v35 }
  0x7b   : > { %300 = vadd.xlane.f32.xlu1 %v299_v38  ;;  %v1229_v38 = vsub.s32 %v391_v32, %v381_v31 }
  0x7c   : > { %294 = vadd.xlane.f32.xlu0 %v293_v39  ;;  %v1231_v39 = vsub.s32 %v398_v33, %v381_v31 }
  0x7f   : > { %297 = vadd.xlane.f32.xlu1 %v296_v42 }
  0x80   : > { %303 = vadd.xlane.f32.xlu0 %v302_v43 }
  0x83   : > { %312 = vadd.xlane.f32.xlu1 %v311_v46 }
  0x84   : > { %306 = vadd.xlane.f32.xlu0 %v305_v47 }
  0x87   : > { %309 = vadd.xlane.f32.xlu1 %v308_v50 }
  0x88   : > { %315 = vadd.xlane.f32.xlu0 %v314_v51 }
  0x8b   : > { %324 = vadd.xlane.f32.xlu1 %v323_v54 }
  0x8c   : > { %318 = vadd.xlane.f32.xlu0 %v317_v55 }
  0x8f   : > { %321 = vadd.xlane.f32.xlu1 %v320_v58 }
  0x90   : > { %327 = vadd.xlane.f32.xlu0 %v326_v59 }
  0x93   : > { %333 = vadd.xlane.f32.xlu1 %v332_v63 }
  0x94   : > { %330 = vadd.xlane.f32.xlu0 %v329_v62 }
  0xe4   : > { %v253_v8 = vpop.xlane.xlu1 %252 }
  0xe5   : > { %v241_v9 = vpop.xlane.xlu0 %240  ;;  %v408_v44 = vrot.slane %v253_v8, %v1227_v37 }
  0xe6   : > { %v383_v45 = vrot.slane %v241_v9, %v1227_v37 }
  0xe8   : > { %v256_v10 = vpop.xlane.xlu1 %255 }
  0xe9   : > { %v244_v11 = vpop.xlane.xlu0 %243  ;;  %v412_v42 = vrot.slane %v256_v10, %v1225_v36 }
  0xea   : > { %v388_v43 = vrot.slane %v244_v11, %v1225_v36 }
  0xeb   : > { %v413_v55 = vsel %vm389_vm2, %v412_v42, %v408_v44 }
  0xec   : > { %v259_v12 = vpop.xlane.xlu1 %258  ;;  %v390_v56 = vsel %vm389_vm2, %v388_v43, %v383_v45 }
  0xed   : > { %v247_v13 = vpop.xlane.xlu0 %246  ;;  %v417_v46 = vrot.slane %v259_v12, %v1229_v38 }
  0xee   : > { %v395_v47 = vrot.slane %v247_v13, %v1229_v38 }
  0xef   : > { %v418_v58 = vsel %vm396_vm3, %v417_v46, %v413_v55 }
  0xf0   : > { %v268_v14 = vpop.xlane.xlu1 %267  ;;  %v397_v59 = vsel %vm396_vm3, %v395_v47, %v390_v56 }
  0xf1   : > { %v265_v15 = vpop.xlane.xlu0 %264  ;;  %v431_v48 = vrot.slane %v268_v14, %v1225_v36 }
  0xf2   : > { %v427_v49 = vrot.slane %v265_v15, %v1227_v37 }
  0xf4   : > { %v262_v16 = vpop.xlane.xlu1 %261  ;;  %v432_v60 = vsel %vm389_vm2, %v431_v48, %v427_v49 }
  0xf5   : > { %v250_v17 = vpop.xlane.xlu0 %249  ;;  %v422_v50 = vrot.slane %v262_v16, %v1231_v39 }
  0xf6   : > { %v402_v51 = vrot.slane %v250_v17, %v1231_v39 }
  0xf7   : > { %v423_v61 = vsel %vm403_vm4, %v422_v50, %v418_v58 }
  0xf8   : > { %v1205_v18 = vpop.xlane.xlu1 %276  ;;  %v404_v62 = vsel %vm403_vm4, %v402_v51, %v397_v59 }
  0xf9   : > { %v271_v19 = vpop.xlane.xlu0 %270  ;;  %v446_v2 = vrot.slane %v1205_v18, %v1227_v37 }
  0xfa   : > { %v436_v54 = vrot.slane %v271_v19, %v1229_v38 }
  0xfc   : > { %v274_v20 = vpop.xlane.xlu1 %273  ;;  %v437_v3 = vsel %vm396_vm3, %v436_v54, %v432_v60 }
  0xfd   : > { %v1207_v21 = vpop.xlane.xlu0 %279  ;;  %v441_v57 = vrot.slane %v274_v20, %v1231_v39 }
  0xfe   : > { %v450_v63 = vrot.slane %v1207_v21, %v1225_v36 }
  0xff   : > { %v442_v6 = vsel %vm403_vm4, %v441_v57, %v437_v3 }
 0x100   : > { %v1209_v22 = vpop.xlane.xlu1 %288  ;;  %v451_v14 = vsel %vm389_vm2, %v450_v63, %v446_v2 }
 0x101   : > { %v1211_v23 = vpop.xlane.xlu0 %282  ;;  %v465_v10 = vrot.slane %v1209_v22, %v1227_v37 }
 0x102   : > { %v455_v4 = vrot.slane %v1211_v23, %v1229_v38 }
 0x104   : > { %v1213_v25 = vpop.xlane.xlu1 %285  ;;  %v456_v20 = vsel %vm396_vm3, %v455_v4, %v451_v14 }
 0x105   : > { %v1215_v26 = vpop.xlane.xlu0 %291  ;;  %v460_v7 = vrot.slane %v1213_v25, %v1231_v39 }
 0x106   : > { %v469_v5 = vrot.slane %v1215_v26, %v1225_v36 }
 0x107   : > { %v461_v24 = vsel %vm403_vm4, %v460_v7, %v456_v20 }
 0x108   : > { %v1217_v28 = vpop.xlane.xlu1 %300  ;;  %v470_v21 = vsel %vm389_vm2, %v469_v5, %v465_v10 }
 0x109   : > { %v1219_v29 = vpop.xlane.xlu0 %294  ;;  %v484_v15 = vrot.slane %v1217_v28, %v1227_v37  ;;  %v539_v28 = vsel %vm538_vm5, %v423_v61, %v404_v62 }
 0x10a   : > { %v474_v8 = vrot.slane %v1219_v29, %v1229_v38  ;;  %v541_v32 = vsel %vm540_vm6, %v442_v6, %v539_v28 }
 0x10c   : > { %v1221_v34 = vpop.xlane.xlu1 %297  ;;  %v475_v25 = vsel %vm396_vm3, %v474_v8, %v470_v21 }
 0x10d   : > { %v1223_v35 = vpop.xlane.xlu0 %303  ;;  %v479_v11 = vrot.slane %v1221_v34, %v1231_v39 }
 0x10e   : > { %v488_v9 = vrot.slane %v1223_v35, %v1225_v36 }
 0x10f   : > { %v480_v29 = vsel %vm403_vm4, %v479_v11, %v475_v25 }
 0x110   : > { %v1233_v40 = vpop.xlane.xlu1 %312  ;;  %v489_v26 = vsel %vm389_vm2, %v488_v9, %v484_v15 }
 0x111   : > { %v1235_v41 = vpop.xlane.xlu0 %306  ;;  %v503_v22 = vrot.slane %v1233_v40, %v1227_v37 }
 0x112   : > { %v493_v12 = vrot.slane %v1235_v41, %v1229_v38 }
 0x114   : > { %v310_v52 = vpop.xlane.xlu1 %309  ;;  %v494_v30 = vsel %vm396_vm3, %v493_v12, %v489_v26 }
 0x115   : > { %v316_v53 = vpop.xlane.xlu0 %315  ;;  %v498_v16 = vrot.slane %v310_v52, %v1231_v39 }
 0x116   : > { %v507_v13 = vrot.slane %v316_v53, %v1225_v36 }
 0x117   : > { %v499_v33 = vsel %vm403_vm4, %v498_v16, %v494_v30 }
 0x118   : > { %v325_v0 = vpop.xlane.xlu1 %324  ;;  %v508_v31 = vsel %vm389_vm2, %v507_v13, %v503_v22 }
 0x119   : > { %v319_v1 = vpop.xlane.xlu0 %318  ;;  %v522_v34 = vrot.slane %v325_v0, %v1227_v37 }
 0x11a   : > { %v512_v17 = vrot.slane %v319_v1, %v1229_v38 }
 0x11c   : > { %v322_v18 = vpop.xlane.xlu1 %321  ;;  %v513_v35 = vsel %vm396_vm3, %v512_v17, %v508_v31 }
 0x11d   : > { %v328_v19 = vpop.xlane.xlu0 %327  ;;  %v517_v23 = vrot.slane %v322_v18, %v1231_v39 }
 0x11e   : > { %v526_v27 = vrot.slane %v328_v19, %v1225_v36  ;;  %v543_v36 = vsel %vm542_vm7, %v461_v24, %v541_v32 }
 0x11f   : > { %v518_v42 = vsel %vm403_vm4, %v517_v23, %v513_v35  ;;  %v545_v45 = vsel %vm544_vm8, %v480_v29, %v543_v36 }
 0x120   : > { %v334_v41 = vpop.xlane.xlu1 %333  ;;  %v527_v46 = vsel %vm389_vm2, %v526_v27, %v522_v34  ;;  %v547_v37 = vsel %vm546_vm9, %v499_v33, %v545_v45 }
 0x121   : > { %v331_v40 = vpop.xlane.xlu0 %330  ;;  %v536_v44 = vrot.slane %v334_v41, %v1231_v39  ;;  %v549_v49 = vsel %vm548_vm10, %v518_v42, %v547_v37 }
 0x122   : > { %v531_v43 = vrot.slane %v331_v40, %v1229_v38  ;;  %v732_v38 = vld [vmem:[%s1365_s2] ss:$0 sm:$0xff] }
 0x124   : > { %v532_v47 = vsel %vm396_vm3, %v531_v43, %v527_v46 }
 0x125   : > { %v537_v48 = vsel %vm403_vm4, %v536_v44, %v532_v47 }
 0x126   : > { %v551_v50 = vsel %vm550_vm11, %v537_v48, %v549_v49 }
 0x127   : > { %754 = vmatmul.mubr.msk.f32.vlgmr.msra.gmra.mrb[0].mxu0 %vm552_vm12, %v551_v50 }
 0x1fa   : > { %v621_v39 = vpop.f32.mrb[0].mxu0 }
 0x1fb   : > { %v622_v51 = vadd.f32 %v732_v38, %v621_v39  ;;  %v755_v52 = vpop.f32.mrb[1].mxu0 }
 0x1fd   : > { %625 = vst [vmem:[%s204_s4] sm:$0xff] %v622_v51 }
 0x1fe   : > { %895 = shalt.err (!%p892_p7)
}
 0x1ff   : > { %s896_s22 = scalar_lea.hbm %s1319_s27, 128  ;;  %s900_s10 = scalar_lea.hbm %s1366_s3, 256 }
 0x200   : > { %p897_p9 = scmp.ne.s32.totalorder %s1319_s27, %s896_s22  ;;  %p901_p5 = scmp.lt.u32.totalorder %s1319_s27, %s1366_s3 }
 0x201   : > { %p902_p11 = scmp.lt.u32.totalorder %s900_s10, %s896_s22  ;;  %p904_p4 = scmp.lt.u32.totalorder %s896_s22, %s1319_s27 }
 0x202   : > { %p898_p1 = pnand %p897_p9, %p1076_p12 }
 0x203   : > { %p903_p2 = por %p902_p11, %p901_p5 }
 0x204   : > { %p899_p0 = pneg %p898_p1 }
 0x205   : > { %p905_p6 = por %p904_p4, %p903_p2 }
 0x207   : > { %p906_p8 = pnand %p905_p6, %p899_p0 }
 0x209   : > { %909 = shalt.err (!%p906_p8)
}
 0x20a   : > { %768 = dma.vmem_to_hbm [thread:$0]  (%p1076_p12), %s1321_s25, 128, %s1319_s27, %s627_s28  }
 0x20b PF: > { %s652_s20 = sand.u32 1, %s940_s12   ;;  %p1381_p10 = scmp.ne.s32.totalorder %s1371_s19, 0 }
 0x20c   : > { %p1382_p13 = scmp.ge.s32.totalorder %s952_s15, 2  ;;  %s653_s8 = scalar_lea.sflag [#allocation4], %s652_s20 }
 0x20e   : > { %p779_p3 = pnand %p1382_p13, %p1381_p10 }
 0x210   : > { %935 = dma.done.wait (!%p779_p3), %s653_s8, 128  }
 0x211   : > { %937 = vsyncadd (!%p779_p3), %s653_s8, 4294967168  ;;  %p17_p7 = scmp.ge.s32.totalorder %s1038_s24, 4   ;;  %s1383_s12 = smov %s944_s13 }
 0x212   : > { %s1384_s13 = smov %s948_s14  ;;  %s1385_s14 = smov %s1072_s17 }
 0x213   : > { %s1386_s15 = smov %s1038_s24  ;;  %19 = sbr.rel (!%p17_p7) target bundleno = 6 (0x6), region = 81 }
 0x21a   :  { %658 = vsyncpa [#allocation3], 1 }
 0x21b   :  { %660 = vsyncpa [#allocation3 + $0x1], 1 }
 0x21c   :  { %661 = vsyncpa [#allocation6], 1 }
 0x21d   :  { %662 = vsyncpa [#allocation4], 1 }
 0x21e   :  { %664 = vsyncpa [#allocation4 + $0x1], 1 }

</bundles_post_ra>
